<compile_context>
chip_gen: v7x
topology: tpu7x:2x2x1
jax: 0.10.0
libtpu: 0.0.40
codegen_flags: <defaults>
</compile_context>

<pallas_src>
import functools

import jax
import jax.numpy as jnp
from jax.experimental import pallas as pl
from jax.experimental.pallas import tpu as pltpu


# ----------------------------------------------------------------------------
# Fused encoder kernel: all layers, all batch elements, one invocation,
# no grid (single block, whole operands in VMEM).
# ----------------------------------------------------------------------------
def _encoder_kernel(a_ref, x_ref, h0_ref, wcomb_ref, wch_ref, b_ref, out_ref,
                    *, num_layers, dh):
    f32 = jnp.float32
    a = a_ref[...]                        # (B*N, B*N) block-diagonal adjacency
    xf = x_ref[...]                       # (B*N, Dh)  layer-0 input (zero-padded)

    for layer in range(num_layers):       # L is small and static -> unrolled
        h = h0_ref[layer]                 # (BN, Dh)
        wcomb = wcomb_ref[layer]          # (2Dh, 3Dh)  [[Wrx|Wux|Wcx],[Wrh|Wuh|0]]
        wch = wch_ref[layer]              # (Dh, Dh)
        bias = b_ref[layer]               # (1, 3Dh)    [br | bu | bc]

        # Fused gate matmul: one (BN,2Dh)@(2Dh,3Dh) then a single A@.
        # Re-association (A@X)@W == A@(X@W) keeps math identical to the
        # original per-path formulation.
        g = jnp.dot(jnp.concatenate([xf, h], axis=-1), wcomb,
                    preferred_element_type=f32)            # (BN, 3Dh)
        ag = jnp.dot(a, g, preferred_element_type=f32)     # (BN, 3Dh)

        # Fused reset/update gates: one sigmoid over a (BN, 2Dh) tile.
        ru = jax.nn.sigmoid(ag[:, :2 * dh] + bias[:, :2 * dh])
        r = ru[:, :dh]                                     # (BN, Dh)
        u = ru[:, dh:]                                     # (BN, Dh)

        # Candidate: graph conv of (r*H)@Wch, plus the pure x-path slice.
        arh = jnp.dot(a, jnp.dot(r * h, wch, preferred_element_type=f32),
                      preferred_element_type=f32)          # (BN, Dh)
        c = jnp.tanh(ag[:, 2 * dh:] + arh + bias[:, 2 * dh:])

        h_new = u * h + (1.0 - u) * c                      # (BN, Dh)

        # Direct store — no repacking; wrapper reshapes (L,BN,Dh)->(L,B,N,Dh).
        out_ref[layer] = h_new.astype(out_ref.dtype)

        xf = h_new                                         # next layer input


# ----------------------------------------------------------------------------
# One-time constant packing (hoisted out of the per-call path)
# ----------------------------------------------------------------------------
def pack_layer_params(layer_params, dh):
    """Stack per-layer params into packed tensors.

    W_comb = [[Wrx|Wux|Wcx] (x rows zero-padded to Dh), [Wrh|Wuh|0]]  (2Dh,3Dh)
    """
    wcomb_l, wch_l, b_l = [], [], []
    for p in layer_params:
        wx = jnp.concatenate([p["wrx"], p["wux"], p["wcx"]], axis=1)  # (Din, 3Dh)
        din = wx.shape[0]
        if din < dh:
            wx = jnp.pad(wx, ((0, dh - din), (0, 0)))                 # (Dh, 3Dh)
        wh = jnp.concatenate([p["wrh"], p["wuh"],
                              jnp.zeros((dh, dh), jnp.float32)], axis=1)  # (Dh, 3Dh)
        wcomb_l.append(jnp.concatenate([wx, wh], axis=0))             # (2Dh, 3Dh)
        wch_l.append(p["wch"])                                        # (Dh, Dh)
        b_l.append(jnp.concatenate([p["br"], p["bu"], p["bc"]], axis=1))  # (1, 3Dh)
    return jnp.stack(wcomb_l), jnp.stack(wch_l), jnp.stack(b_l)


def prepare_encoder(adj, layer_params, batch, rnn_units):
    """Precompute packed weights + block-diagonal adjacency (once)."""
    wcomb, wch, b = pack_layer_params(layer_params, rnn_units)
    a_big = jnp.kron(jnp.eye(batch, dtype=jnp.float32), adj)   # (B*N, B*N)
    return {"a_big": a_big, "wcomb": wcomb, "wch": wch, "b": b,
            "num_layers": len(layer_params), "rnn_units": rnn_units}


# ----------------------------------------------------------------------------
# Encoder forward (mirrors EncoderModel.forward) — single pallas_call, no grid
# ----------------------------------------------------------------------------
def encoder_forward(inputs, enc, hidden_state=None):
    B, N, Din = inputs.shape
    L = enc["num_layers"]
    Dh = enc["rnn_units"]
    assert Din <= Dh, "layer-0 input dim must be <= rnn_units for weight packing"
    if hidden_state is None:
        hidden_state = jnp.zeros((L, B, N, Dh), jnp.float32)

    BN = B * N
    x_flat = jnp.pad(inputs, ((0, 0), (0, 0), (0, Dh - Din))).reshape(BN, Dh)
    h0_flat = hidden_state.astype(jnp.float32).reshape(L, BN, Dh)

    kernel = functools.partial(_encoder_kernel, num_layers=L, dh=Dh)

    # No grid: single block, whole operands resident in VMEM, no pipeline
    # scaffolding / double buffering (total footprint ~100 KB << VMEM).
    h_flat = pl.pallas_call(
        kernel,
        out_shape=jax.ShapeDtypeStruct((L, BN, Dh), jnp.float32),
    )(enc["a_big"], x_flat, h0_flat, enc["wcomb"], enc["wch"], enc["b"])

    hidden_states = h_flat.reshape(L, B, N, Dh)   # free row-major reshape
    return hidden_states[-1], hidden_states


# ----------------------------------------------------------------------------
# Pure-JAX reference, kept in the ORIGINAL (A@X)@W association / unpacked
# weights, to validate the fused/re-associated kernel.
# ----------------------------------------------------------------------------
def _cell_ref(a, x, h, p):
    ax = jnp.einsum("nm,bmf->bnf", a, x)
    ah = jnp.einsum("nm,bmf->bnf", a, h)
    r = jax.nn.sigmoid(ax @ p["wrx"] + ah @ p["wrh"] + p["br"][None])
    u = jax.nn.sigmoid(ax @ p["wux"] + ah @ p["wuh"] + p["bu"][None])
    arh = jnp.einsum("nm,bmf->bnf", a, r * h)
    c = jnp.tanh(ax @ p["wcx"] + arh @ p["wch"] + p["bc"][None])
    return u * h + (1.0 - u) * c


def _encoder_ref(inputs, adj, layer_params, rnn_units):
    B, N, _ = inputs.shape
    L = len(layer_params)
    h0 = jnp.zeros((L, B, N, rnn_units), jnp.float32)
    hs, out = [], inputs
    for l, p in enumerate(layer_params):
        out = _cell_ref(adj, out, h0[l], p)
        hs.append(out)
    return out, jnp.stack(hs)


# ----------------------------------------------------------------------------
# Deterministic setup
# ----------------------------------------------------------------------------
def make_layer_params(key, din, dh):
    ks = jax.random.split(key, 9)
    s_in = 1.0 / jnp.sqrt(jnp.float32(din))
    s_h = 1.0 / jnp.sqrt(jnp.float32(dh))
    return {
        "wrx": jax.random.uniform(ks[0], (din, dh), jnp.float32, -s_in, s_in),
        "wrh": jax.random.uniform(ks[1], (dh, dh), jnp.float32, -s_h, s_h),
        "wux": jax.random.uniform(ks[2], (din, dh), jnp.float32, -s_in, s_in),
        "wuh": jax.random.uniform(ks[3], (dh, dh), jnp.float32, -s_h, s_h),
        "wcx": jax.random.uniform(ks[4], (din, dh), jnp.float32, -s_in, s_in),
        "wch": jax.random.uniform(ks[5], (dh, dh), jnp.float32, -s_h, s_h),
        "br": jax.random.uniform(ks[6], (1, dh), jnp.float32, -s_h, s_h),
        "bu": jax.random.uniform(ks[7], (1, dh), jnp.float32, -s_h, s_h),
        "bc": jax.random.uniform(ks[8], (1, dh), jnp.float32, -s_h, s_h),
    }


def build_dense_adj(sparse_idx, edge_weights, n):
    """Dense row-normalized adjacency (with self-loops) from COO edges."""
    # TODO(synk): torch_geometric_temporal's GConvGRU uses K-hop Chebyshev
    # filters with symmetric normalization; this is the 1-hop row-normalized
    # dense approximation (same preprocessing as the previous version).
    src, dst = sparse_idx[0], sparse_idx[1]
    a = jnp.zeros((n, n), jnp.float32).at[dst, src].add(edge_weights)
    a = a + jnp.eye(n, dtype=jnp.float32)
    deg = jnp.sum(a, axis=1, keepdims=True)
    return a / jnp.maximum(deg, 1e-6)


if __name__ == "__main__":
    # small config implied by the module:
    #   node_num=16, input_dim=4, rnn_units=32, layer_num=2, batch=2
    batch, node_num, input_dim, rnn_units, layer_num = 2, 16, 4, 32, 2

    key = jax.random.PRNGKey(0)
    k_in, k_w, k_ew = jax.random.split(key, 3)

    # ring graph edges (both directions) as sparse_idx + deterministic weights
    src = jnp.arange(node_num, dtype=jnp.int32)
    dst = (src + 1) % node_num
    sparse_idx = jnp.stack([jnp.concatenate([src, dst]),
                            jnp.concatenate([dst, src])])        # (2, E)
    edge_weights = jax.random.uniform(k_ew, (2 * node_num,), jnp.float32,
                                      0.5, 1.0)
    adj = build_dense_adj(sparse_idx, edge_weights, node_num)

    # per-layer parameters (layer 0 takes input_dim, deeper layers take rnn_units)
    wkeys = jax.random.split(k_w, layer_num)
    layer_params = [
        make_layer_params(wkeys[l],
                          input_dim if l == 0 else rnn_units,
                          rnn_units)
        for l in range(layer_num)
    ]

    # inputs: (batch_size, node_num, input_dim)
    inputs = jax.random.normal(k_in, (batch, node_num, input_dim), jnp.float32)

    # one-time constant packing (hoisted out of the per-step call path)
    enc = prepare_encoder(adj, layer_params, batch, rnn_units)

    output, hidden_state = encoder_forward(inputs, enc)
    output = jax.block_until_ready(output)
    hidden_state = jax.block_until_ready(hidden_state)

    assert output.shape == (batch, node_num, rnn_units)
    assert hidden_state.shape == (layer_num, batch, node_num, rnn_units)

    # sanity-check against pure-JAX reference written in the original
    # (A@X)@W / unpacked-weight formulation
    out_ref, hs_ref = _encoder_ref(inputs, adj, layer_params, rnn_units)
    assert jnp.allclose(output, out_ref, atol=1e-3, rtol=1e-3)
    assert jnp.allclose(hidden_state, hs_ref, atol=1e-3, rtol=1e-3)

    print("KERNEL_OK")
</pallas_src>

<mosaic_0001>
module attributes {stable_mosaic.version = 11 : i64} {
  func.func @_encoder_kernel(%arg0: memref<32x32xf32, #tpu.memory_space<vmem>>, %arg1: memref<32x32xf32, #tpu.memory_space<vmem>>, %arg2: memref<2x32x32xf32, #tpu.memory_space<vmem>>, %arg3: memref<2x64x96xf32, #tpu.memory_space<vmem>>, %arg4: memref<2x32x32xf32, #tpu.memory_space<vmem>>, %arg5: memref<2x1x96xf32, #tpu.memory_space<vmem>>, %arg6: memref<2x32x32xf32, #tpu.memory_space<vmem>>) attributes {dimension_semantics = [], scalar_prefetch = 0 : i64, scratch_operands = 0 : i64, tpu.core_type = #tpu.core_type<tc>} {
    %c0 = arith.constant 0 : index
    %c0_0 = arith.constant 0 : index
    %0 = vector.load %arg0[%c0, %c0_0] : memref<32x32xf32, #tpu.memory_space<vmem>>, vector<32x32xf32>
    %c0_1 = arith.constant 0 : index
    %c0_2 = arith.constant 0 : index
    %1 = vector.load %arg1[%c0_1, %c0_2] : memref<32x32xf32, #tpu.memory_space<vmem>>, vector<32x32xf32>
    %c0_3 = arith.constant 0 : index
    %c0_4 = arith.constant 0 : index
    %c0_5 = arith.constant 0 : index
    %2 = vector.load %arg2[%c0_3, %c0_4, %c0_5] : memref<2x32x32xf32, #tpu.memory_space<vmem>>, vector<1x32x32xf32>
    %3 = vector.shape_cast %2 : vector<1x32x32xf32> to vector<32x32xf32>
    %c0_6 = arith.constant 0 : index
    %c0_7 = arith.constant 0 : index
    %c0_8 = arith.constant 0 : index
    %4 = vector.load %arg3[%c0_6, %c0_7, %c0_8] : memref<2x64x96xf32, #tpu.memory_space<vmem>>, vector<1x64x96xf32>
    %5 = vector.shape_cast %4 : vector<1x64x96xf32> to vector<64x96xf32>
    %c0_9 = arith.constant 0 : index
    %c0_10 = arith.constant 0 : index
    %c0_11 = arith.constant 0 : index
    %6 = vector.load %arg4[%c0_9, %c0_10, %c0_11] : memref<2x32x32xf32, #tpu.memory_space<vmem>>, vector<1x32x32xf32>
    %7 = vector.shape_cast %6 : vector<1x32x32xf32> to vector<32x32xf32>
    %c0_12 = arith.constant 0 : index
    %c0_13 = arith.constant 0 : index
    %c0_14 = arith.constant 0 : index
    %8 = vector.load %arg5[%c0_12, %c0_13, %c0_14] : memref<2x1x96xf32, #tpu.memory_space<vmem>>, vector<1x1x96xf32>
    %9 = vector.shape_cast %8 : vector<1x1x96xf32> to vector<1x96xf32>
    %10 = tpu.concatenate %1, %3 in 1 : vector<32x32xf32>, vector<32x32xf32> -> vector<32x64xf32>
    %cst = arith.constant dense<0.000000e+00> : vector<32x96xf32>
    %11 = tpu.matmul %10, %5, %cst {dimension_numbers = #tpu.dot_dimension_numbers<[1], [0], [0], [1], [0, 0, 1, 1], [], []>} : vector<32x64xf32>, vector<64x96xf32>, vector<32x96xf32> -> vector<32x96xf32>
    %cst_15 = arith.constant dense<0.000000e+00> : vector<32x96xf32>
    %12 = tpu.matmul %0, %11, %cst_15 {dimension_numbers = #tpu.dot_dimension_numbers<[1], [0], [0], [1], [0, 0, 1, 1], [], []>} : vector<32x32xf32>, vector<32x96xf32>, vector<32x96xf32> -> vector<32x96xf32>
    %13 = vector.extract_strided_slice %12 {offsets = [0, 0], sizes = [32, 64], strides = [1, 1]} : vector<32x96xf32> to vector<32x64xf32>
    %14 = vector.extract_strided_slice %9 {offsets = [0, 0], sizes = [1, 64], strides = [1, 1]} : vector<1x96xf32> to vector<1x64xf32>
    %15 = vector.broadcast %14 : vector<1x64xf32> to vector<32x64xf32>
    %16 = arith.addf %13, %15 : vector<32x64xf32>
    %17 = arith.negf %16 : vector<32x64xf32>
    %18 = math.exp %17 : vector<32x64xf32>
    %cst_16 = arith.constant 1.000000e+00 : f32
    %19 = vector.broadcast %cst_16 : f32 to vector<32x64xf32>
    %20 = arith.addf %19, %18 : vector<32x64xf32>
    %21 = arith.divf %19, %20 : vector<32x64xf32>
    %22 = vector.extract_strided_slice %21 {offsets = [0, 0], sizes = [32, 32], strides = [1, 1]} : vector<32x64xf32> to vector<32x32xf32>
    %23 = vector.extract_strided_slice %21 {offsets = [0, 32], sizes = [32, 32], strides = [1, 1]} : vector<32x64xf32> to vector<32x32xf32>
    %24 = arith.mulf %22, %3 : vector<32x32xf32>
    %cst_17 = arith.constant dense<0.000000e+00> : vector<32x32xf32>
    %25 = tpu.matmul %24, %7, %cst_17 {dimension_numbers = #tpu.dot_dimension_numbers<[1], [0], [0], [1], [0, 0, 1, 1], [], []>} : vector<32x32xf32>, vector<32x32xf32>, vector<32x32xf32> -> vector<32x32xf32>
    %cst_18 = arith.constant dense<0.000000e+00> : vector<32x32xf32>
    %26 = tpu.matmul %0, %25, %cst_18 {dimension_numbers = #tpu.dot_dimension_numbers<[1], [0], [0], [1], [0, 0, 1, 1], [], []>} : vector<32x32xf32>, vector<32x32xf32>, vector<32x32xf32> -> vector<32x32xf32>
    %27 = vector.extract_strided_slice %12 {offsets = [0, 64], sizes = [32, 32], strides = [1, 1]} : vector<32x96xf32> to vector<32x32xf32>
    %28 = arith.addf %27, %26 : vector<32x32xf32>
    %29 = vector.extract_strided_slice %9 {offsets = [0, 64], sizes = [1, 32], strides = [1, 1]} : vector<1x96xf32> to vector<1x32xf32>
    %30 = vector.broadcast %29 : vector<1x32xf32> to vector<32x32xf32>
    %31 = arith.addf %28, %30 : vector<32x32xf32>
    %32 = math.tanh %31 : vector<32x32xf32>
    %33 = arith.mulf %23, %3 : vector<32x32xf32>
    %cst_19 = arith.constant 1.000000e+00 : f32
    %34 = vector.broadcast %cst_19 : f32 to vector<32x32xf32>
    %35 = arith.subf %34, %23 : vector<32x32xf32>
    %36 = arith.mulf %35, %32 : vector<32x32xf32>
    %37 = arith.addf %33, %36 : vector<32x32xf32>
    %c0_20 = arith.constant 0 : index
    %c0_21 = arith.constant 0 : index
    %c0_22 = arith.constant 0 : index
    %38 = vector.load %arg6[%c0_20, %c0_21, %c0_22] : memref<2x32x32xf32, #tpu.memory_space<vmem>>, vector<1x32x32xf32>
    %39 = vector.shape_cast %38 : vector<1x32x32xf32> to vector<32x32xf32>
    %40 = vector.shape_cast %37 : vector<32x32xf32> to vector<1x32x32xf32>
    tpu.vector_store %arg6[%c0_20, %c0_21, %c0_22], %40 {strides = array<i32>} : memref<2x32x32xf32, #tpu.memory_space<vmem>>, vector<1x32x32xf32>,
    %c1 = arith.constant 1 : index
    %c0_23 = arith.constant 0 : index
    %c0_24 = arith.constant 0 : index
    %41 = vector.load %arg2[%c1, %c0_23, %c0_24] : memref<2x32x32xf32, #tpu.memory_space<vmem>>, vector<1x32x32xf32>
    %42 = vector.shape_cast %41 : vector<1x32x32xf32> to vector<32x32xf32>
    %c1_25 = arith.constant 1 : index
    %c0_26 = arith.constant 0 : index
    %c0_27 = arith.constant 0 : index
    %43 = vector.load %arg3[%c1_25, %c0_26, %c0_27] : memref<2x64x96xf32, #tpu.memory_space<vmem>>, vector<1x64x96xf32>
    %44 = vector.shape_cast %43 : vector<1x64x96xf32> to vector<64x96xf32>
    %c1_28 = arith.constant 1 : index
    %c0_29 = arith.constant 0 : index
    %c0_30 = arith.constant 0 : index
    %45 = vector.load %arg4[%c1_28, %c0_29, %c0_30] : memref<2x32x32xf32, #tpu.memory_space<vmem>>, vector<1x32x32xf32>
    %46 = vector.shape_cast %45 : vector<1x32x32xf32> to vector<32x32xf32>
    %c1_31 = arith.constant 1 : index
    %c0_32 = arith.constant 0 : index
    %c0_33 = arith.constant 0 : index
    %47 = vector.load %arg5[%c1_31, %c0_32, %c0_33] : memref<2x1x96xf32, #tpu.memory_space<vmem>>, vector<1x1x96xf32>
    %48 = vector.shape_cast %47 : vector<1x1x96xf32> to vector<1x96xf32>
    %49 = tpu.concatenate %37, %42 in 1 : vector<32x32xf32>, vector<32x32xf32> -> vector<32x64xf32>
    %cst_34 = arith.constant dense<0.000000e+00> : vector<32x96xf32>
    %50 = tpu.matmul %49, %44, %cst_34 {dimension_numbers = #tpu.dot_dimension_numbers<[1], [0], [0], [1], [0, 0, 1, 1], [], []>} : vector<32x64xf32>, vector<64x96xf32>, vector<32x96xf32> -> vector<32x96xf32>
    %cst_35 = arith.constant dense<0.000000e+00> : vector<32x96xf32>
    %51 = tpu.matmul %0, %50, %cst_35 {dimension_numbers = #tpu.dot_dimension_numbers<[1], [0], [0], [1], [0, 0, 1, 1], [], []>} : vector<32x32xf32>, vector<32x96xf32>, vector<32x96xf32> -> vector<32x96xf32>
    %52 = vector.extract_strided_slice %51 {offsets = [0, 0], sizes = [32, 64], strides = [1, 1]} : vector<32x96xf32> to vector<32x64xf32>
    %53 = vector.extract_strided_slice %48 {offsets = [0, 0], sizes = [1, 64], strides = [1, 1]} : vector<1x96xf32> to vector<1x64xf32>
    %54 = vector.broadcast %53 : vector<1x64xf32> to vector<32x64xf32>
    %55 = arith.addf %52, %54 : vector<32x64xf32>
    %56 = arith.negf %55 : vector<32x64xf32>
    %57 = math.exp %56 : vector<32x64xf32>
    %cst_36 = arith.constant 1.000000e+00 : f32
    %58 = vector.broadcast %cst_36 : f32 to vector<32x64xf32>
    %59 = arith.addf %58, %57 : vector<32x64xf32>
    %60 = arith.divf %58, %59 : vector<32x64xf32>
    %61 = vector.extract_strided_slice %60 {offsets = [0, 0], sizes = [32, 32], strides = [1, 1]} : vector<32x64xf32> to vector<32x32xf32>
    %62 = vector.extract_strided_slice %60 {offsets = [0, 32], sizes = [32, 32], strides = [1, 1]} : vector<32x64xf32> to vector<32x32xf32>
    %63 = arith.mulf %61, %42 : vector<32x32xf32>
    %cst_37 = arith.constant dense<0.000000e+00> : vector<32x32xf32>
    %64 = tpu.matmul %63, %46, %cst_37 {dimension_numbers = #tpu.dot_dimension_numbers<[1], [0], [0], [1], [0, 0, 1, 1], [], []>} : vector<32x32xf32>, vector<32x32xf32>, vector<32x32xf32> -> vector<32x32xf32>
    %cst_38 = arith.constant dense<0.000000e+00> : vector<32x32xf32>
    %65 = tpu.matmul %0, %64, %cst_38 {dimension_numbers = #tpu.dot_dimension_numbers<[1], [0], [0], [1], [0, 0, 1, 1], [], []>} : vector<32x32xf32>, vector<32x32xf32>, vector<32x32xf32> -> vector<32x32xf32>
    %66 = vector.extract_strided_slice %51 {offsets = [0, 64], sizes = [32, 32], strides = [1, 1]} : vector<32x96xf32> to vector<32x32xf32>
    %67 = arith.addf %66, %65 : vector<32x32xf32>
    %68 = vector.extract_strided_slice %48 {offsets = [0, 64], sizes = [1, 32], strides = [1, 1]} : vector<1x96xf32> to vector<1x32xf32>
    %69 = vector.broadcast %68 : vector<1x32xf32> to vector<32x32xf32>
    %70 = arith.addf %67, %69 : vector<32x32xf32>
    %71 = math.tanh %70 : vector<32x32xf32>
    %72 = arith.mulf %62, %42 : vector<32x32xf32>
    %cst_39 = arith.constant 1.000000e+00 : f32
    %73 = vector.broadcast %cst_39 : f32 to vector<32x32xf32>
    %74 = arith.subf %73, %62 : vector<32x32xf32>
    %75 = arith.mulf %74, %71 : vector<32x32xf32>
    %76 = arith.addf %72, %75 : vector<32x32xf32>
    %c1_40 = arith.constant 1 : index
    %c0_41 = arith.constant 0 : index
    %c0_42 = arith.constant 0 : index
    %77 = vector.load %arg6[%c1_40, %c0_41, %c0_42] : memref<2x32x32xf32, #tpu.memory_space<vmem>>, vector<1x32x32xf32>
    %78 = vector.shape_cast %77 : vector<1x32x32xf32> to vector<32x32xf32>
    %79 = vector.shape_cast %76 : vector<32x32xf32> to vector<1x32x32xf32>
    tpu.vector_store %arg6[%c1_40, %c0_41, %c0_42], %79 {strides = array<i32>} : memref<2x32x32xf32, #tpu.memory_space<vmem>>, vector<1x32x32xf32>,
    return
  }
}

</mosaic_0001>

<bundles_post_ra>
// kernel: tpu_custom_call.1
= control target key start
LH: loop header
LB: loop body
LE: loop exit
PB: predicated region body
PF: predicated region fallthrough
CT: control target
= control target key end

     0   :  { %11 = vsyncpa [#allocation3], 0  ;;  %s2101_s0 = inlined_call_operand.hbm [shape: f32[32,32], index: 0, kind: input, shape index: {}]   ;;  %s2102_s1 = inlined_call_operand.hbm [shape: f32[32,32], index: 1, kind: input, shape index: {}]   ;;  %s2103_s2 = inlined_call_operand.hbm [shape: f32[2,32,32], index: 2, kind: input, shape index: {}]   ;;  %s2104_s3 = inlined_call_operand.hbm [shape: f32[2,64,96], index: 3, kind: input, shape index: {}]   ;;  %s2105_s4 = inlined_call_operand.hbm [shape: f32[2,32,32], index: 4, kind: input, shape index: {}]   ;;  %s2106_s5 = inlined_call_operand.vmem [shape: f32[2,1,96], index: 5, kind: input, shape index: {}]   ;;  %s2107_s6 = inlined_call_operand.hbm [shape: f32[2,32,32], index: 6, kind: output, shape index: {}]  }
   0x1   :  { %12 = vsyncpa [#allocation6], 0 }
   0x2   :  { %13 = vsyncpa [#allocation9], 0 }
   0x3   :  { %14 = vsyncpa [#allocation4], 0  ;;  %s1698_s21 = smov [#allocation5]   ;;  %s1699_s23 = smov [#allocation8]  }
   0x4   :  { %s32_s22 = sshll.u32 %s1698_s21, 4  ;;  %s56_s24 = sshll.u32 %s1699_s23, 4  ;;  %s33_s22 = int_to_ptr.vmem [resolvable:$true] %s32_s22  ;;  %s1744_s24 = int_to_ptr.vmem [resolvable:$true] %s56_s24 }
   0x5   :  { %s1558_s27 = scalar_lea.hbm %s2102_s1, 512 }
   0x6   :  { %p1559_p0 = scmp.ne.s32.totalorder %s2102_s1, %s1558_s27  ;;  %p1562_p1 = scmp.lt.u32.totalorder %s1558_s27, %s2102_s1 }
   0x8   :  { %p1564_p2 = pnand %p1562_p1, %p1559_p0 }
   0xa   :  { %1567 = shalt.err (!%p1564_p2)
}
   0xb   :  { %s1568_s8 = scalar_lea.vmem %s33_s22, 512  ;;  %p1573_p4 = scmp.lt.s32.totalorder %s33_s22, %s33_s22 }
   0xc   :  { %p1569_p3 = scmp.ne.s32.totalorder %s33_s22, %s1568_s8  ;;  %p1574_p5 = scmp.lt.s32.totalorder %s1568_s8, %s1568_s8 }
   0xe   :  { %p1575_p6 = por %p1574_p5, %p1573_p4 }
  0x10   :  { %p1576_p7 = pnand %p1575_p6, %p1569_p3 }
  0x12   :  { %1579 = shalt.err (!%p1576_p7)
}
  0x13   :  { %s1700_s9 = smov 128   ;;  %s1701_s10 = smov 8  }
  0x14   :  { %38 = dma.hbm_to_vmem [thread:$0]  %s2102_s1, 512, %s33_s22, [#allocation6], %s1700_s9, %s1700_s9, %s1701_s10  }
  0x15   :  { %s1580_s15 = scalar_lea.hbm %s2104_s3, 2048 }
  0x16   :  { %p1581_p8 = scmp.ne.s32.totalorder %s2104_s3, %s1580_s15  ;;  %p1584_p9 = scmp.lt.u32.totalorder %s1580_s15, %s2104_s3 }
  0x18   :  { %p1586_p10 = pnand %p1584_p9, %p1581_p8 }
  0x1a   :  { %1589 = shalt.err (!%p1586_p10)
}
  0x1b   :  { %s1590_s20 = scalar_lea.vmem %s1744_s24, 2048  ;;  %p1595_p12 = scmp.lt.s32.totalorder %s1744_s24, %s1744_s24 }
  0x1c   :  { %p1591_p11 = scmp.ne.s32.totalorder %s1744_s24, %s1590_s20  ;;  %p1596_p13 = scmp.lt.s32.totalorder %s1590_s20, %s1590_s20 }
  0x1e   :  { %p1597_p0 = por %p1596_p13, %p1595_p12 }
  0x20   :  { %p1598_p1 = pnand %p1597_p0, %p1591_p11 }
  0x22   :  { %1601 = shalt.err (!%p1598_p1)
}
  0x23   :  { %62 = dma.hbm_to_vmem [thread:$0]  %s2104_s3, 2048, %s1744_s24, [#allocation9], %s1700_s9, %s1700_s9, %s1701_s10  }
  0x24   :  { %s1702_s22 = smov [#allocation2]   ;;  %s1703_s25 = smov [#allocation7]  }
  0x25   :  { %s20_s23 = sshll.u32 %s1702_s22, 4  ;;  %s44_s26 = sshll.u32 %s1703_s25, 4  ;;  %s21_s23 = int_to_ptr.vmem [resolvable:$true] %s20_s23  ;;  %s1781_s26 = int_to_ptr.vmem [resolvable:$true] %s44_s26 }
  0x26   :  { %s1602_s29 = scalar_lea.hbm %s2101_s0, 512 }
  0x27   :  { %p1603_p2 = scmp.ne.s32.totalorder %s2101_s0, %s1602_s29  ;;  %p1606_p3 = scmp.lt.u32.totalorder %s1602_s29, %s2101_s0 }
  0x29   :  { %p1608_p4 = pnand %p1606_p3, %p1603_p2 }
  0x2b   :  { %1611 = shalt.err (!%p1608_p4)
}
  0x2c   :  { %s1612_s3 = scalar_lea.vmem %s21_s23, 512  ;;  %p1617_p6 = scmp.lt.s32.totalorder %s21_s23, %s21_s23 }
  0x2d   :  { %p1613_p5 = scmp.ne.s32.totalorder %s21_s23, %s1612_s3  ;;  %p1618_p7 = scmp.lt.s32.totalorder %s1612_s3, %s1612_s3 }
  0x2f   :  { %p1619_p8 = por %p1618_p7, %p1617_p6 }
  0x31   :  { %p1620_p9 = pnand %p1619_p8, %p1613_p5 }
  0x33   :  { %1623 = shalt.err (!%p1620_p9)
}
  0x34   :  { %26 = dma.hbm_to_vmem [thread:$0]  %s2101_s0, 512, %s21_s23, [#allocation3], %s1700_s9, %s1700_s9, %s1701_s10  }
  0x35   :  { %s1624_s15 = scalar_lea.hbm %s2103_s2, 1024 }
  0x36   :  { %p1625_p10 = scmp.ne.s32.totalorder %s2103_s2, %s1624_s15  ;;  %p1628_p11 = scmp.lt.u32.totalorder %s1624_s15, %s2103_s2 }
  0x38   :  { %p1630_p12 = pnand %p1628_p11, %p1625_p10 }
  0x3a   :  { %1633 = shalt.err (!%p1630_p12)
}
  0x3b   :  { %s1634_s20 = scalar_lea.vmem %s1781_s26, 1024  ;;  %p1639_p0 = scmp.lt.s32.totalorder %s1781_s26, %s1781_s26 }
  0x3c   :  { %p1635_p13 = scmp.ne.s32.totalorder %s1781_s26, %s1634_s20  ;;  %p1640_p1 = scmp.lt.s32.totalorder %s1634_s20, %s1634_s20 }
  0x3e   :  { %p1641_p2 = por %p1640_p1, %p1639_p0 }
  0x40   :  { %p1642_p3 = pnand %p1641_p2, %p1635_p13 }
  0x42   :  { %1645 = shalt.err (!%p1642_p3)
}
  0x43   :  { %50 = dma.hbm_to_vmem [thread:$0]  %s2103_s2, 1024, %s1781_s26, [#allocation6], %s1700_s9, %s1700_s9, %s1701_s10  }
  0x44   :  { %s1704_s21 = smov [#allocation10]   ;;  %s1646_s27 = scalar_lea.hbm %s2105_s4, 1024 }
  0x45   :  { %s68_s22 = sshll.u32 %s1704_s21, 4  ;;  %p1647_p4 = scmp.ne.s32.totalorder %s2105_s4, %s1646_s27  ;;  %s69_s22 = int_to_ptr.vmem [resolvable:$true] %s68_s22 }
  0x46   :  { %p1650_p5 = scmp.lt.u32.totalorder %s1646_s27, %s2105_s4 }
  0x48   :  { %p1652_p6 = pnand %p1650_p5, %p1647_p4 }
  0x4a   :  { %1655 = shalt.err (!%p1652_p6)
}
  0x4b   :  { %s1656_s8 = scalar_lea.vmem %s69_s22, 1024  ;;  %p1661_p8 = scmp.lt.s32.totalorder %s69_s22, %s69_s22 }
  0x4c   :  { %p1657_p7 = scmp.ne.s32.totalorder %s69_s22, %s1656_s8  ;;  %p1662_p9 = scmp.lt.s32.totalorder %s1656_s8, %s1656_s8 }
  0x4e   :  { %p1663_p10 = por %p1662_p9, %p1661_p8 }
  0x50   :  { %p1664_p11 = pnand %p1663_p10, %p1657_p7 }
  0x52   :  { %1667 = shalt.err (!%p1664_p11)
}
  0x53   :  { %74 = dma.hbm_to_vmem [thread:$0]  %s2105_s4, 1024, %s69_s22, [#allocation9], %s1700_s9, %s1700_s9, %s1701_s10  }
  0x54   :  { %1690 = dma.done.wait [#allocation3], 512  }
  0x55   :  { %1691 = vsyncadd [#allocation3], 4294966784 }
  0x56   :  { %1692 = dma.done.wait [#allocation6], 1536  }
  0x57   :  { %1693 = vsyncadd [#allocation6], 4294965760 }
  0x58   :  { %1694 = dma.done.wait [#allocation9], 3072  }
  0x59   :  { %1695 = vsyncadd [#allocation9], 4294964224  ;;  %v1833_v0 = vld [vmem:[#allocation7] sm:$0xff]  ;;  %v1835_v1 = vld [vmem:[#allocation7 + $0x10] sm:$0xff]  ;;  %s1705_s11 = smov 32   ;;  %vm133_vm0 = vcmask 261120  }
  0x5a   :  { %121 = vrot.lane.b32.xlu0 %v1833_v0, %s1705_s11  ;;  %125 = vrot.lane.b32.xlu1 %v1835_v1, %s1705_s11  ;;  %v1841_v2 = vld [vmem:[#allocation7 + $0x8] sm:$0xff]  ;;  %v104_v3 = vld [vmem:[#allocation8] sm:$0xff]  ;;  %v1843_v5 = vld [vmem:[#allocation7 + $0x18] sm:$0xff]  ;;  %vm138_vm1 = vcmask 523264   ;;  %s1706_s24 = smov 64   ;;  %s1707_s12 = smov 96  }
  0x5b   :  { %v105_v4 = vld [vmem:[#allocation8 + $0x8] sm:$0xff]  ;;  %v106_v7 = vld [vmem:[#allocation8 + $0x10] sm:$0xff]  ;;  %v107_v8 = vld [vmem:[#allocation8 + $0x18] sm:$0xff] }
  0x5c   :  { %v1419_v6 = vpack.c.bf16 %v105_v4, %v104_v3  ;;  %v1423_v9 = vpack.c.bf16 %v107_v8, %v106_v7  ;;  %v108_v10 = vld [vmem:[#allocation8 + $0x20] sm:$0xff]  ;;  %v109_v11 = vld [vmem:[#allocation8 + $0x28] sm:$0xff]  ;;  %v110_v13 = vld [vmem:[#allocation8 + $0x30] sm:$0xff] }
  0x5d   :  { %v1427_v12 = vpack.c.bf16 %v109_v11, %v108_v10  ;;  %v111_v14 = vld [vmem:[#allocation8 + $0x38] sm:$0xff]  ;;  %v96_v16 = vld [vmem:[#allocation5] sm:$0xff]  ;;  %v98_v20 = vld [vmem:[#allocation5 + $0x10] sm:$0xff] }
  0x5e   :  { %1420 = vmatprep.subr.bf16.mxu0 %v1419_v6  ;;  %123 = vrot.lane.b32.xlu0 %v1841_v2, %s1705_s11  ;;  %v1431_v15 = vpack.c.bf16 %v111_v14, %v110_v13  ;;  %v97_v21 = vld [vmem:[#allocation5 + $0x8] sm:$0xff]  ;;  %v99_v25 = vld [vmem:[#allocation5 + $0x18] sm:$0xff]  ;;  %v1869_v28 = vld [vmem:[#allocation2] sm:$0xff] }
  0x5f   :  { %127 = vrot.lane.b32.xlu1 %v1843_v5, %s1705_s11  ;;  %1422 = vmatpush3.bf16.msra.mxu0 %v1419_v6  ;;  %v1875_v35 = vld [vmem:[#allocation2 + $0x8] sm:$0xff]  ;;  %v1877_v36 = vld [vmem:[#allocation2 + $0x10] sm:$0xff]  ;;  %v1883_v37 = vld [vmem:[#allocation2 + $0x18] sm:$0xff] }
  0x60   :  { %1424 = vmatprep.subr.bf16.mxu0 %v1423_v9  ;;  %1321 = vmatprep.mubr.msk.f32.mxu1 %vm133_vm0, %v1869_v28  ;;  %v112_v38 = vld [vmem:[#allocation10] sm:$0xff]  ;;  %v113_v39 = vld [vmem:[#allocation10 + $0x8] sm:$0xff]  ;;  %v114_v41 = vld [vmem:[#allocation10 + $0x10] sm:$0xff] }
  0x61   :  { %v1443_v40 = vpack.c.bf16 %v113_v39, %v112_v38  ;;  %v115_v42 = vld [vmem:[#allocation10 + $0x18] sm:$0xff]  ;;  %v1890_v44 = vld [vmem:[%s2106_s5] ss:$0 sm:$0xff] }
  0x62   :  { %v1447_v43 = vpack.c.bf16 %v115_v42, %v114_v41  ;;  %v639_v42 = vld [vmem:[#allocation8 + $0x40] sm:$0xff] }
  0x63   :  { %1426 = vmatpush3.bf16.msra.mxu0 %v1423_v9 }
  0x64   :  { %1428 = vmatprep.subr.bf16.mxu0 %v1427_v12 }
  0x67   :  { %1430 = vmatpush3.bf16.msra.mxu0 %v1427_v12 }
  0x68   :  { %1432 = vmatprep.subr.bf16.mxu0 %v1431_v15 }
  0x6b   :  { %1434 = vmatpush3.bf16.msra.mxu0 %v1431_v15 }
  0xcc   :  { %v1849_v17 = vpop.permute.xlu0 %121  ;;  %v1851_v18 = vpop.permute.xlu1 %125 }
  0xcd   :  { %v134_v19 = vsel %vm133_vm0, %v96_v16, %v1849_v17  ;;  %v136_v22 = vsel %vm133_vm0, %v98_v20, %v1851_v18 }
  0xce   :  { %1307 = vmatprep.mubr.msk.f32.mxu0 %vm138_vm1, %v134_v19 }
  0xd0   :  { %v1858_v23 = vpop.permute.xlu0 %123 }
  0xd1   :  { %v1860_v24 = vpop.permute.xlu1 %127  ;;  %v135_v26 = vsel %vm133_vm0, %v97_v21, %v1858_v23 }
  0xd2   :  { %1308 = vmatmul.mubr.msk.f32.vlgmr.msra.gmra.mrb[0].mxu0 %vm138_vm1, %v135_v26  ;;  %v137_v27 = vsel %vm133_vm0, %v99_v25, %v1860_v24 }
  0xd3   :  { %1310 = vmatprep.mubr.msk.f32.mxu0 %vm138_vm1, %v136_v22 }
  0xd6   :  { %1311 = vmatmul.mubr.msk.f32.gmra.mrb[2].mxu0 %vm138_vm1, %v137_v27 }
  0xd7   :  { %1349 = vmatprep.mubr.msk.f32.mxu0 %vm133_vm0, %v1869_v28 }
 0x1a5   :  { %v1309_v29 = vpop.f32.mrb[0].mxu0 }
 0x1a6   :  { %v217_v30 = vpop.f32.mrb[1].mxu0 }
 0x1a7   :  { %v1435_v31 = vpack.c.bf16 %v1309_v29, %v217_v30 }
 0x1a9   :  { %v1312_v32 = vpop.f32.mrb[2].mxu0  ;;  %1436 = vmatprep.subr.bf16.mxu1 %v1435_v31 }
 0x1aa   :  { %v227_v33 = vpop.f32.mrb[3].mxu0  ;;  %1438 = vmatpush3.bf16.msra.mxu1 %v1435_v31 }
 0x1ab   :  { %v1439_v34 = vpack.c.bf16 %v1312_v32, %v227_v33 }
 0x1ad   :  { %1440 = vmatprep.subr.bf16.mxu1 %v1439_v34 }
 0x1ae   :  { %1442 = vmatpush3.bf16.msra.mxu1 %v1439_v34 }
 0x1af   :  { %1444 = vmatprep.subr.bf16.mxu1 %v1443_v40 }
 0x1b1   :  { %1322 = vmatmul.mubr.msk.f32.vlgmr.msra.gmra.mrb[0].mxu1 %vm133_vm0, %v1875_v35 }
 0x1b2   :  { %1324 = vmatprep.mubr.msk.f32.mxu1 %vm133_vm0, %v1877_v36  ;;  %1446 = vmatpush3.bf16.msra.mxu1 %v1443_v40 }
 0x1b3   :  { %1448 = vmatprep.subr.bf16.mxu1 %v1447_v43 }
 0x1b5   :  { %1325 = vmatmul.mubr.msk.f32.gmra.mrb[2].mxu1 %vm133_vm0, %v1883_v37 }
 0x1b6   :  { %1450 = vmatpush3.bf16.msra.mxu1 %v1447_v43  ;;  %v640_v43 = vld [vmem:[#allocation8 + $0x48] sm:$0xff] }
 0x284   :  { %v1892_v45 = vpop.f32.mrb[0].mxu1 }
 0x285   :  { %v340_v46 = vadd.f32 %v1892_v45, %v1890_v44  ;;  %v1896_v47 = vpop.f32.mrb[1].mxu1 }
 0x286   :  { %v339_v48 = vadd.f32 %v1890_v44, %v1896_v47 }
 0x287   :  { %v1186_v49 = vmul.f32 -1.442695, %v340_v46 }
 0x288   :  { %v1185_v50 = vmul.f32 -1.442695, %v339_v48  ;;  %v1900_v51 = vpop.f32.mrb[2].mxu1  ;;  %v642_v48 = vld [vmem:[#allocation8 + $0x58] sm:$0xff] }
 0x289   :  { %1510 = vpow2.f32 %v1186_v49  ;;  %v342_v52 = vadd.f32 %v1900_v51, %v1890_v44  ;;  %v1904_v53 = vpop.f32.mrb[3].mxu1 }
 0x28a   :  { %1512 = vpow2.f32 %v1185_v50  ;;  %v341_v54 = vadd.f32 %v1890_v44, %v1904_v53  ;;  %v643_v50 = vld [vmem:[#allocation8 + $0x60] sm:$0xff] }
 0x28b   :  { %v1188_v55 = vmul.f32 -1.442695, %v342_v52 }
 0x28c   :  { %v1187_v56 = vmul.f32 -1.442695, %v341_v54  ;;  %v1960_v54 = vld [vmem:[#allocation7 + $0x30] sm:$0xff] }
 0x28d   :  { %1514 = vpow2.f32 %v1188_v55  ;;  %v1964_v55 = vld [vmem:[#allocation7 + $0x38] sm:$0xff] }
 0x28e   :  { %1516 = vpow2.f32 %v1187_v56  ;;  %v645_v56 = vld [vmem:[#allocation8 + $0x70] sm:$0xff] }
 0x293   :  { %v1511_v57 = vpop.eup %1510 }
 0x294   :  { %v1513_v58 = vpop.eup %1512  ;;  %v356_v59 = vadd.f32 1.0, %v1511_v57  ;;  %v646_v57 = vld [vmem:[#allocation8 + $0x78] sm:$0xff] }
 0x295   :  { %v355_v60 = vadd.f32 1.0, %v1513_v58  ;;  %v1471_v58 = vpack.c.bf16 %v646_v57, %v645_v56 }
 0x296   :  { %1518 = vrcp.f32 %v356_v59 }
 0x297   :  { %v1515_v61 = vpop.eup %1514  ;;  %1520 = vrcp.f32 %v355_v60 }
 0x298   :  { %v1517_v62 = vpop.eup %1516  ;;  %v358_v63 = vadd.f32 1.0, %v1515_v61 }
 0x299   :  { %v357_v3 = vadd.f32 1.0, %v1517_v62 }
 0x29a   :  { %1522 = vrcp.f32 %v358_v63 }
 0x29b   :  { %1524 = vrcp.f32 %v357_v3 }
 0x2a0   :  { %v1908_v4 = vpop.eup %1518 }
 0x2a1   :  { %v1910_v6 = vpop.eup %1520  ;;  %v368_v8 = vmul.f32 %v1908_v4, %v1841_v2  ;;  %v586_v59 = vsub.f32 1.0, %v1908_v4  ;;  %v582_v61 = vmul.f32 %v1908_v4, %v1858_v23 }
 0x2a2   :  { %v367_v7 = vmul.f32 %v1910_v6, %v1833_v0  ;;  %v585_v63 = vsub.f32 1.0, %v1910_v6 }
 0x2a4   :  { %v1916_v9 = vpop.eup %1522  ;;  %1335 = vmatprep.mubr.msk.f32.mxu1 %vm133_vm0, %v367_v7 }
 0x2a5   :  { %v1919_v10 = vpop.eup %1524  ;;  %1336 = vmatmul.mubr.msk.f32.vlgmr.msra.gmra.mrb[4].mxu1 %vm133_vm0, %v368_v8  ;;  %v370_v12 = vmul.f32 %v1916_v9, %v1843_v5 }
 0x2a6   :  { %v369_v11 = vmul.f32 %v1919_v10, %v1835_v1  ;;  %v583_v23 = vmul.f32 %v1919_v10, %v1851_v18 }
 0x2a8   :  { %1338 = vmatprep.mubr.msk.f32.mxu1 %vm133_vm0, %v369_v11  ;;  %v581_v11 = vmul.f32 %v1910_v6, %v1849_v17  ;;  %v584_v17 = vmul.f32 %v1916_v9, %v1860_v24 }
 0x2a9   :  { %1339 = vmatmul.mubr.msk.f32.gmra.mrb[6].mxu1 %vm133_vm0, %v370_v12  ;;  %v587_v12 = vsub.f32 1.0, %v1919_v10 }
 0x378   :  { %v1337_v0 = vpop.f32.mrb[4].mxu1 }
 0x379   :  { %v449_v2 = vpop.f32.mrb[5].mxu1 }
 0x37a   :  { %v1451_v13 = vpack.c.bf16 %v1337_v0, %v449_v2 }
 0x37c   :  { %v1340_v14 = vpop.f32.mrb[6].mxu1  ;;  %1452 = vmatprep.subr.bf16.mxu0 %v1451_v13 }
 0x37d   :  { %v459_v15 = vpop.f32.mrb[7].mxu1  ;;  %1454 = vmatpush3.bf16.msra.mxu0 %v1451_v13 }
 0x37e   :  { %v1455_v16 = vpack.c.bf16 %v1340_v14, %v459_v15  ;;  %v588_v15 = vsub.f32 1.0, %v1916_v9 }
 0x380   :  { %1456 = vmatprep.subr.bf16.mxu0 %v1455_v16 }
 0x381   :  { %1458 = vmatpush3.bf16.msra.mxu0 %v1455_v16 }
 0x384   :  { %1350 = vmatmul.mubr.msk.f32.vlgmr.msra.gmra.mrb[4].mxu0 %vm133_vm0, %v1875_v35 }
 0x385   :  { %1352 = vmatprep.mubr.msk.f32.mxu0 %vm133_vm0, %v1877_v36 }
 0x388   :  { %1353 = vmatmul.mubr.msk.f32.gmra.mrb[6].mxu0 %vm133_vm0, %v1883_v37 }
 0x389   :  { %1385 = vmatprep.mubr.msk.f32.mxu0 %vm133_vm0, %v1869_v28 }
 0x457   :  { %v1351_v1 = vpop.f32.mrb[4].mxu0 }
 0x458   :  { %559 = vrot.lane.b32.xlu1 %v1351_v1, %s1706_s24  ;;  %v534_v5 = vpop.f32.mrb[5].mxu0 }
 0x459   :  { %557 = vrot.lane.b32.xlu0 %v534_v5, %s1706_s24 }
 0x45b   :  { %v1354_v19 = vpop.f32.mrb[6].mxu0 }
 0x45c   :  { %563 = vrot.lane.b32.xlu1 %v1354_v19, %s1706_s24  ;;  %v544_v20 = vpop.f32.mrb[7].mxu0 }
 0x45d   :  { %561 = vrot.lane.b32.xlu0 %v544_v20, %s1706_s24 }
 0x4ca   :  { %v560_v21 = vpop.permute.xlu1 %559 }
 0x4cb   :  { %v570_v22 = vadd.f32 %v1892_v45, %v560_v21  ;;  %v558_v25 = vpop.permute.xlu0 %557  ;;  %v641_v45 = vld [vmem:[#allocation8 + $0x50] sm:$0xff] }
 0x4cc   :  { %v569_v26 = vadd.f32 %v558_v25, %v1896_v47  ;;  %v1459_v47 = vpack.c.bf16 %v640_v43, %v639_v42  ;;  %v1463_v49 = vpack.c.bf16 %v642_v48, %v641_v45  ;;  %v2019_v42 = vld [vmem:[%s2106_s5 + $0x1] ss:$0 sm:$0xff]  ;;  %s1708_s5 = smov [#allocation11]  }
 0x4cd   :  { %v574_v27 = vadd.f32 %v1890_v44, %v570_v22  ;;  %s1162_s15 = sshll.u32 %s1708_s5, 4  ;;  %s1163_s15 = int_to_ptr.vmem [resolvable:$true] %s1162_s15 }
 0x4ce   :  { %v573_v29 = vadd.f32 %v1890_v44, %v569_v26  ;;  %v564_v30 = vpop.permute.xlu1 %563  ;;  %1460 = vmatprep.subr.bf16.mxu1 %v1459_v47  ;;  %s1668_s16 = scalar_lea.vmem %s1163_s15, 1024  ;;  %p1673_p13 = scmp.lt.s32.totalorder %s1163_s15, %s1163_s15 }
 0x4cf   :  { %1526 = vtanh.f32 %v574_v27  ;;  %v572_v31 = vadd.f32 %v1900_v51, %v564_v30  ;;  %v562_v32 = vpop.permute.xlu0 %561  ;;  %v644_v51 = vld [vmem:[#allocation8 + $0x68] sm:$0xff]  ;;  %1462 = vmatpush3.bf16.msra.mxu1 %v1459_v47  ;;  %p1669_p12 = scmp.ne.s32.totalorder %s1163_s15, %s1668_s16  ;;  %p1674_p0 = scmp.lt.s32.totalorder %s1668_s16, %s1668_s16 }
 0x4d0   :  { %1528 = vtanh.f32 %v573_v29  ;;  %v571_v33 = vadd.f32 %v562_v32, %v1904_v53  ;;  %1464 = vmatprep.subr.bf16.mxu1 %v1463_v49  ;;  %v1467_v52 = vpack.c.bf16 %v644_v51, %v643_v50  ;;  %v1956_v53 = vld [vmem:[#allocation7 + $0x28] sm:$0xff] }
 0x4d1   :  { %v576_v34 = vadd.f32 %v1890_v44, %v572_v31  ;;  %p1675_p1 = por %p1674_p0, %p1673_p13 }
 0x4d2   :  { %v575_v38 = vadd.f32 %v1890_v44, %v571_v33  ;;  %v1952_v44 = vld [vmem:[#allocation7 + $0x20] sm:$0xff] }
 0x4d3   :  { %1530 = vtanh.f32 %v576_v34  ;;  %1466 = vmatpush3.bf16.msra.mxu1 %v1463_v49  ;;  %v649_v34 = vld [vmem:[#allocation10 + $0x28] sm:$0xff]  ;;  %p1676_p2 = pnand %p1675_p1, %p1669_p12 }
 0x4d4   :  { %1532 = vtanh.f32 %v575_v38  ;;  %1468 = vmatprep.subr.bf16.mxu1 %v1467_v52 }
 0x4d7   :  { %1470 = vmatpush3.bf16.msra.mxu1 %v1467_v52 }
 0x4d8   :  { %1472 = vmatprep.subr.bf16.mxu1 %v1471_v58 }
 0x4d9   :  { %v1527_v39 = vpop.eup %1526 }
 0x4da   :  { %v1529_v40 = vpop.eup %1528  ;;  %595 = vrot.lane.b32.xlu1 %v1527_v39, %s1707_s12  ;;  %v650_v39 = vld [vmem:[#allocation10 + $0x30] sm:$0xff] }
 0x4db   :  { %593 = vrot.lane.b32.xlu0 %v1529_v40, %s1707_s12  ;;  %1474 = vmatpush3.bf16.msra.mxu1 %v1471_v58  ;;  %v651_v40 = vld [vmem:[#allocation10 + $0x38] sm:$0xff] }
 0x4dd   :  { %v1531_v41 = vpop.eup %1530 }
 0x4de   :  { %v1533_v46 = vpop.eup %1532  ;;  %599 = vrot.lane.b32.xlu1 %v1531_v41, %s1707_s12  ;;  %v1487_v41 = vpack.c.bf16 %v651_v40, %v650_v39 }
 0x4df   :  { %597 = vrot.lane.b32.xlu0 %v1533_v46, %s1707_s12 }
 0x4e2   :  { %658 = vrot.lane.b32.xlu1 %v1952_v44, %s1705_s11 }
 0x4e6   :  { %660 = vrot.lane.b32.xlu1 %v1956_v53, %s1705_s11 }
 0x4ea   :  { %662 = vrot.lane.b32.xlu1 %v1960_v54, %s1705_s11 }
 0x4ee   :  { %664 = vrot.lane.b32.xlu1 %v1964_v55, %s1705_s11 }
 0x54c   :  { %v596_v60 = vpop.permute.xlu1 %595 }
 0x54d   :  { %v606_v62 = vmul.f32 %v596_v60, %v586_v59  ;;  %v594_v3 = vpop.permute.xlu0 %593 }
 0x54e   :  { %v605_v8 = vmul.f32 %v594_v3, %v585_v63 }
 0x54f   :  { %v610_v7 = vadd.f32 %v606_v62, %v582_v61 }
 0x550   :  { %v609_v2 = vadd.f32 %v605_v8, %v581_v11  ;;  %v600_v14 = vpop.permute.xlu1 %599 }
 0x551   :  { %619 = vrot.lane.b32.xlu0 %v610_v7, %s1707_s12  ;;  %v598_v0 = vpop.permute.xlu0 %597  ;;  %v608_v4 = vmul.f32 %v600_v14, %v588_v15 }
 0x552   :  { %v607_v13 = vmul.f32 %v598_v0, %v587_v12 }
 0x553   :  { %v612_v6 = vadd.f32 %v608_v4, %v584_v17 }
 0x554   :  { %v611_v16 = vadd.f32 %v607_v13, %v583_v23  ;;  %v1984_v1 = vpop.permute.xlu1 %658 }
 0x555   :  { %617 = vrot.lane.b32.xlu0 %v609_v2, %s1707_s12 }
 0x558   :  { %v1986_v5 = vpop.permute.xlu1 %660 }
 0x559   :  { %621 = vrot.lane.b32.xlu0 %v611_v16, %s1707_s12 }
 0x55c   :  { %v1989_v10 = vpop.permute.xlu1 %662 }
 0x55d   :  { %623 = vrot.lane.b32.xlu0 %v612_v6, %s1707_s12 }
 0x560   :  { %v2002_v22 = vpop.permute.xlu1 %664 }
 0x5c3   :  { %v620_v19 = vpop.permute.xlu0 %619 }
 0x5c4   :  { %630 = vst.msk [vmem:[#allocation11 + $0x8] sm:$0xff] %vm133_vm0, %v620_v19  ;;  %v671_v9 = vsel %vm133_vm0, %v620_v19, %v1986_v5 }
 0x5c7   :  { %v618_v18 = vpop.permute.xlu0 %617 }
 0x5c8   :  { %629 = vst.msk [vmem:[#allocation11] sm:$0xff] %vm133_vm0, %v618_v18  ;;  %v670_v24 = vsel %vm133_vm0, %v618_v18, %v1984_v1 }
 0x5c9   :  { %1371 = vmatprep.mubr.msk.f32.mxu1 %vm138_vm1, %v670_v24 }
 0x5ca   :  { %1372 = vmatmul.mubr.msk.f32.vlgmr.msra.gmra.mrb[8].mxu1 %vm138_vm1, %v671_v9 }
 0x5cb   :  { %v622_v20 = vpop.permute.xlu0 %621 }
 0x5cc   :  { %631 = vst.msk [vmem:[#allocation11 + $0x10] sm:$0xff] %vm133_vm0, %v622_v20  ;;  %v672_v21 = vsel %vm133_vm0, %v622_v20, %v1989_v10 }
 0x5cd   :  { %1374 = vmatprep.mubr.msk.f32.mxu1 %vm138_vm1, %v672_v21 }
 0x5cf   :  { %v624_v25 = vpop.permute.xlu0 %623 }
 0x5d0   :  { %632 = vst.msk [vmem:[#allocation11 + $0x18] sm:$0xff] %vm133_vm0, %v624_v25  ;;  %v673_v26 = vsel %vm133_vm0, %v624_v25, %v2002_v22 }
 0x5d1   :  { %1375 = vmatmul.mubr.msk.f32.gmra.mrb[10].mxu1 %vm138_vm1, %v673_v26 }
 0x5d2   :  { %1413 = vmatprep.mubr.msk.f32.mxu1 %vm133_vm0, %v1869_v28  ;;  %v648_v28 = vld [vmem:[#allocation10 + $0x20] sm:$0xff] }
 0x5d3   :  { %v1483_v38 = vpack.c.bf16 %v649_v34, %v648_v28 }
 0x69d   :  { %v1373_v27 = vpop.f32.mrb[8].mxu1 }
 0x69e   :  { %v752_v29 = vpop.f32.mrb[9].mxu1 }
 0x69f   :  { %v1475_v30 = vpack.c.bf16 %v1373_v27, %v752_v29 }
 0x6a1   :  { %1476 = vmatprep.subr.bf16.mxu0 %v1475_v30 }
 0x6a2   :  { %1478 = vmatpush3.bf16.msra.mxu0 %v1475_v30 }
 0x6a4   :  { %v1376_v31 = vpop.f32.mrb[10].mxu1 }
 0x6a5   :  { %v762_v32 = vpop.f32.mrb[11].mxu1 }
 0x6a6   :  { %v1479_v33 = vpack.c.bf16 %v1376_v31, %v762_v32 }
 0x6a8   :  { %1480 = vmatprep.subr.bf16.mxu0 %v1479_v33 }
 0x6a9   :  { %1482 = vmatpush3.bf16.msra.mxu0 %v1479_v33 }
 0x6aa   :  { %1484 = vmatprep.subr.bf16.mxu0 %v1483_v38 }
 0x6ac   :  { %1386 = vmatmul.mubr.msk.f32.vlgmr.msra.gmra.mrb[8].mxu0 %vm133_vm0, %v1875_v35 }
 0x6ad   :  { %1388 = vmatprep.mubr.msk.f32.mxu0 %vm133_vm0, %v1877_v36  ;;  %1486 = vmatpush3.bf16.msra.mxu0 %v1483_v38 }
 0x6ae   :  { %1488 = vmatprep.subr.bf16.mxu0 %v1487_v41 }
 0x6b0   :  { %1389 = vmatmul.mubr.msk.f32.gmra.mrb[10].mxu0 %vm133_vm0, %v1883_v37 }
 0x6b1   :  { %1490 = vmatpush3.bf16.msra.mxu0 %v1487_v41 }
 0x77f   :  { %v1387_v43 = vpop.f32.mrb[8].mxu0 }
 0x780   :  { %v863_v45 = vadd.f32 %v1387_v43, %v2019_v42  ;;  %v837_v46 = vpop.f32.mrb[9].mxu0 }
 0x781   :  { %v862_v47 = vadd.f32 %v2019_v42, %v837_v46 }
 0x782   :  { %v1208_v48 = vmul.f32 -1.442695, %v863_v45 }
 0x783   :  { %v1207_v49 = vmul.f32 -1.442695, %v862_v47  ;;  %v2023_v50 = vpop.f32.mrb[10].mxu0 }
 0x784   :  { %1534 = vpow2.f32 %v1208_v48  ;;  %v865_v51 = vadd.f32 %v2023_v50, %v2019_v42  ;;  %v2027_v52 = vpop.f32.mrb[11].mxu0 }
 0x785   :  { %1536 = vpow2.f32 %v1207_v49  ;;  %v864_v56 = vadd.f32 %v2019_v42, %v2027_v52 }
 0x786   :  { %v1210_v57 = vmul.f32 -1.442695, %v865_v51 }
 0x787   :  { %v1209_v58 = vmul.f32 -1.442695, %v864_v56 }
 0x788   :  { %1538 = vpow2.f32 %v1210_v57 }
 0x789   :  { %1540 = vpow2.f32 %v1209_v58 }
 0x78e   :  { %v1535_v59 = vpop.eup %1534 }
 0x78f   :  { %v1537_v60 = vpop.eup %1536  ;;  %v879_v61 = vadd.f32 1.0, %v1535_v59 }
 0x790   :  { %v878_v62 = vadd.f32 1.0, %v1537_v60 }
 0x791   :  { %1542 = vrcp.f32 %v879_v61 }
 0x792   :  { %v1539_v63 = vpop.eup %1538  ;;  %1544 = vrcp.f32 %v878_v62 }
 0x793   :  { %v1541_v3 = vpop.eup %1540  ;;  %v881_v7 = vadd.f32 1.0, %v1539_v63 }
 0x794   :  { %v880_v8 = vadd.f32 1.0, %v1541_v3 }
 0x795   :  { %1546 = vrcp.f32 %v881_v7 }
 0x796   :  { %1548 = vrcp.f32 %v880_v8 }
 0x79b   :  { %v1543_v11 = vpop.eup %1542 }
 0x79c   :  { %v2031_v12 = vpop.eup %1544  ;;  %v891_v2 = vmul.f32 %v1543_v11, %v1956_v53  ;;  %v1109_v34 = vsub.f32 1.0, %v1543_v11  ;;  %v1105_v40 = vmul.f32 %v1543_v11, %v1986_v5 }
 0x79d   :  { %v890_v0 = vmul.f32 %v2031_v12, %v1952_v44  ;;  %v1108_v39 = vsub.f32 1.0, %v2031_v12 }
 0x79f   :  { %v2036_v13 = vpop.eup %1546  ;;  %1399 = vmatprep.mubr.msk.f32.mxu0 %vm133_vm0, %v890_v0 }
 0x7a0   :  { %v2039_v14 = vpop.eup %1548  ;;  %1400 = vmatmul.mubr.msk.f32.vlgmr.msra.gmra.mrb[12].mxu0 %vm133_vm0, %v891_v2  ;;  %v893_v23 = vmul.f32 %v2036_v13, %v1964_v55  ;;  %v1111_v47 = vsub.f32 1.0, %v2036_v13  ;;  %v1107_v51 = vmul.f32 %v2036_v13, %v2002_v22 }
 0x7a1   :  { %v892_v15 = vmul.f32 %v2039_v14, %v1960_v54  ;;  %v1106_v56 = vmul.f32 %v2039_v14, %v1989_v10 }
 0x7a3   :  { %1402 = vmatprep.mubr.msk.f32.mxu0 %vm133_vm0, %v892_v15 }
 0x7a4   :  { %1403 = vmatmul.mubr.msk.f32.gmra.mrb[14].mxu0 %vm133_vm0, %v893_v23 }
 0x873   :  { %v1401_v44 = vpop.f32.mrb[12].mxu0 }
 0x874   :  { %v972_v53 = vpop.f32.mrb[13].mxu0 }
 0x875   :  { %v1491_v4 = vpack.c.bf16 %v1401_v44, %v972_v53 }
 0x877   :  { %v1404_v16 = vpop.f32.mrb[14].mxu0  ;;  %1492 = vmatprep.subr.bf16.mxu1 %v1491_v4 }
 0x878   :  { %v982_v17 = vpop.f32.mrb[15].mxu0  ;;  %1494 = vmatpush3.bf16.msra.mxu1 %v1491_v4 }
 0x879   :  { %v1495_v6 = vpack.c.bf16 %v1404_v16, %v982_v17 }
 0x87b   :  { %1496 = vmatprep.subr.bf16.mxu1 %v1495_v6 }
 0x87c   :  { %1498 = vmatpush3.bf16.msra.mxu1 %v1495_v6 }
 0x87f   :  { %1414 = vmatmul.mubr.msk.f32.vlgmr.msra.gmra.mrb[12].mxu1 %vm133_vm0, %v1875_v35 }
 0x880   :  { %1416 = vmatprep.mubr.msk.f32.mxu1 %vm133_vm0, %v1877_v36 }
 0x883   :  { %1417 = vmatmul.mubr.msk.f32.gmra.mrb[14].mxu1 %vm133_vm0, %v1883_v37 }
 0x952   :  { %v1415_v54 = vpop.f32.mrb[12].mxu1 }
 0x953   :  { %1082 = vrot.lane.b32.xlu1 %v1415_v54, %s1706_s24  ;;  %v1057_v55 = vpop.f32.mrb[13].mxu1 }
 0x954   :  { %1080 = vrot.lane.b32.xlu0 %v1057_v55, %s1706_s24 }
 0x956   :  { %v1418_v19 = vpop.f32.mrb[14].mxu1 }
 0x957   :  { %1086 = vrot.lane.b32.xlu1 %v1418_v19, %s1706_s24  ;;  %v1067_v18 = vpop.f32.mrb[15].mxu1 }
 0x958   :  { %1084 = vrot.lane.b32.xlu0 %v1067_v18, %s1706_s24 }
 0x9c5   :  { %v1083_v24 = vpop.permute.xlu1 %1082 }
 0x9c6   :  { %v1093_v35 = vadd.f32 %v1387_v43, %v1083_v24  ;;  %v1081_v9 = vpop.permute.xlu0 %1080  ;;  %v1104_v43 = vmul.f32 %v2031_v12, %v1984_v1 }
 0x9c7   :  { %v1092_v20 = vadd.f32 %v1081_v9, %v837_v46 }
 0x9c8   :  { %v1097_v36 = vadd.f32 %v2019_v42, %v1093_v35 }
 0x9c9   :  { %v1096_v37 = vadd.f32 %v2019_v42, %v1092_v20  ;;  %v1087_v21 = vpop.permute.xlu1 %1086 }
 0x9ca   :  { %1550 = vtanh.f32 %v1097_v36  ;;  %v1095_v25 = vadd.f32 %v2023_v50, %v1087_v21  ;;  %v1085_v26 = vpop.permute.xlu0 %1084  ;;  %v1110_v50 = vsub.f32 1.0, %v2039_v14 }
 0x9cb   :  { %1552 = vtanh.f32 %v1096_v37  ;;  %v1094_v27 = vadd.f32 %v1085_v26, %v2027_v52 }
 0x9cc   :  { %v1099_v29 = vadd.f32 %v2019_v42, %v1095_v25 }
 0x9cd   :  { %v1098_v30 = vadd.f32 %v2019_v42, %v1094_v27 }
 0x9ce   :  { %1554 = vtanh.f32 %v1099_v29 }
 0x9cf   :  { %1556 = vtanh.f32 %v1098_v30 }
 0x9d4   :  { %v1551_v31 = vpop.eup %1550 }
 0x9d5   :  { %v1553_v32 = vpop.eup %1552  ;;  %1118 = vrot.lane.b32.xlu1 %v1551_v31, %s1707_s12 }
 0x9d6   :  { %1116 = vrot.lane.b32.xlu0 %v1553_v32, %s1707_s12 }
 0x9d8   :  { %v1555_v33 = vpop.eup %1554 }
 0x9d9   :  { %v1557_v28 = vpop.eup %1556  ;;  %1122 = vrot.lane.b32.xlu1 %v1555_v33, %s1707_s12 }
 0x9da   :  { %1120 = vrot.lane.b32.xlu0 %v1557_v28, %s1707_s12 }
 0xa47   :  { %v1119_v38 = vpop.permute.xlu1 %1118 }
 0xa48   :  { %v1129_v41 = vmul.f32 %v1119_v38, %v1109_v34  ;;  %v1117_v42 = vpop.permute.xlu0 %1116 }
 0xa49   :  { %v1128_v45 = vmul.f32 %v1117_v42, %v1108_v39 }
 0xa4a   :  { %v1133_v46 = vadd.f32 %v1129_v41, %v1105_v40 }
 0xa4b   :  { %v1132_v48 = vadd.f32 %v1128_v45, %v1104_v43  ;;  %v1123_v49 = vpop.permute.xlu1 %1122 }
 0xa4c   :  { %v1131_v52 = vmul.f32 %v1123_v49, %v1111_v47  ;;  %1142 = vrot.lane.b32.xlu1 %v1133_v46, %s1707_s12  ;;  %v1121_v5 = vpop.permute.xlu0 %1120 }
 0xa4d   :  { %v1130_v57 = vmul.f32 %v1121_v5, %v1110_v50  ;;  %1140 = vrot.lane.b32.xlu0 %v1132_v48, %s1707_s12 }
 0xa4e   :  { %v1135_v1 = vadd.f32 %v1131_v52, %v1107_v51 }
 0xa4f   :  { %v1134_v58 = vadd.f32 %v1130_v57, %v1106_v56 }
 0xa50   :  { %1146 = vrot.lane.b32.xlu1 %v1135_v1, %s1707_s12 }
 0xa51   :  { %1144 = vrot.lane.b32.xlu0 %v1134_v58, %s1707_s12 }
 0xabe   :  { %v1143_v59 = vpop.permute.xlu1 %1142 }
 0xabf   :  { %1154 = vst.msk [vmem:[#allocation11 + $0x28] sm:$0xff] %vm133_vm0, %v1143_v59  ;;  %v1141_v22 = vpop.permute.xlu0 %1140 }
 0xac0   :  { %1153 = vst.msk [vmem:[#allocation11 + $0x20] sm:$0xff] %vm133_vm0, %v1141_v22 }
 0xac2   :  { %v1147_v60 = vpop.permute.xlu1 %1146 }
 0xac3   :  { %1156 = vst.msk [vmem:[#allocation11 + $0x38] sm:$0xff] %vm133_vm0, %v1147_v60  ;;  %v1145_v10 = vpop.permute.xlu0 %1144 }
 0xac4   :  { %1155 = vst.msk [vmem:[#allocation11 + $0x30] sm:$0xff] %vm133_vm0, %v1145_v10 }
 0xac5   :  { %1679 = shalt.err (!%p1676_p2)
}
 0xac6   :  { %s1680_s19 = scalar_lea.hbm %s2107_s6, 1024 }
 0xac7   :  { %p1681_p3 = scmp.ne.s32.totalorder %s2107_s6, %s1680_s19  ;;  %p1684_p4 = scmp.lt.u32.totalorder %s1680_s19, %s2107_s6 }
 0xac9   :  { %p1686_p5 = pnand %p1684_p4, %p1681_p3 }
 0xacb   :  { %1689 = shalt.err (!%p1686_p5)
}
 0xacc   :  { %1168 = dma.vmem_to_hbm [thread:$0]  %s1163_s15, 1024, %s2107_s6, [#allocation4], %s1700_s9, %s1700_s9, %s1701_s10  }
 0xacd   :  { %1696 = dma.done.wait [#allocation4], 1024  }
 0xace   :  { %1697 = vsyncadd [#allocation4], 4294966272 }
 0xacf   :  { %1172 = vsyncpa [#allocation3], 1 }
 0xad0   :  { %1173 = vsyncpa [#allocation6], 1 }
 0xad1   :  { %1174 = vsyncpa [#allocation9], 1 }
 0xad2   :  { %1175 = vsyncpa [#allocation4], 1 }

</bundles_post_ra>
